<compile_context>
chip_gen: v5e
topology: v5e:2x2
jax: 0.10.0
libtpu: 0.0.40
codegen_flags: <defaults>
</compile_context>

<pallas_src>
import functools

import jax
import jax.numpy as jnp
from jax.experimental import pallas as pl
from jax.experimental.pallas import tpu as pltpu


def _row_valid(n_rows, seq_len, offset):
    """In-kernel (n_rows, 1) bool mask: row r may read row r+offset of the
    SAME sequence (rows are batch-major flattened; tiles hold whole sequences).
    Built from broadcasted_iota so nothing is captured as a kernel constant."""
    pos = jax.lax.broadcasted_iota(jnp.int32, (n_rows, 1), 0) % seq_len
    return (pos + offset >= 0) & (pos + offset <= seq_len - 1)


def _shift_rows(y, offset):
    """Circular row shift: out[r] == y[(r + offset) % n] (XLU sublane roll).
    Rows that wrap across the tile edge must be masked by the caller."""
    if offset == 0:
        return y
    n = y.shape[0]
    return pltpu.roll(y, shift=(-offset) % n, axis=0)


def span_cnn_kernel(x_ref, w_stack_ref, b_stack_ref, w_span_ref,
                    hconv_ref, logits_ref, *, seq_len, window_size):
    TM, E = x_ref.shape                 # TM = row tile (multiple of seq_len)
    WS = window_size
    n_span = w_span_ref.shape[0]        # 4 span kernel sizes
    out_w = w_span_ref.shape[2]         # 4 * binary_span_dim = 8
    cdtype = x_ref.dtype                # MXU operand dtype (bf16 prod / f32 check)

    biases = b_stack_ref[...]           # (3, E) f32
    b_lin = biases[0:1, :]
    b_conv = biases[1:2, :]
    b_comp = biases[2:3, :out_w]

    # ---- dropout (eval-mode identity) + linear -------------------------------
    # TODO(synk): training-mode dropout (p=0.5) not implemented; eval identity.
    h_fc = jnp.dot(x_ref[...], w_stack_ref[0],
                   preferred_element_type=jnp.float32) + b_lin            # f32

    # ---- conv_1: Conv1d(E, E, WS, padding=WS//2) ------------------------------
    # Each tap is an aligned (TM,E)x(E,E) matmul; the tap offset is realised by
    # rolling rows (XLU slot) and zeroing rows that would cross a sequence
    # boundary. Roll/select stay f32 (VPU/XLU); cast to `cdtype` only at the
    # MXU boundary. All taps are hoisted so the WS dots issue back-to-back.
    pad = WS // 2
    taps = []
    for k in range(WS):
        d = k - pad                                   # input offset of this tap
        t = h_fc if d == 0 else jnp.where(_row_valid(TM, seq_len, d),
                                          _shift_rows(h_fc, d), 0.0)
        taps.append(t.astype(cdtype))
    h_conv = jnp.dot(taps[0], w_stack_ref[1], preferred_element_type=jnp.float32)
    for k in range(1, WS):
        h_conv = h_conv + jnp.dot(taps[k], w_stack_ref[1 + k],
                                  preferred_element_type=jnp.float32)
    h_conv = h_conv + b_conv
    hconv_ref[...] = h_conv.astype(hconv_ref.dtype)

    # ---- span_{1..4}_filter fused with the shared linear2 --------------------
    # w_span_ref[j] holds (w_span_k[j] @ w2) for every span size k, packed into
    # lane blocks of 2 and zeroed for taps j >= k, so all four heads reduce to
    # n_span back-to-back matmuls into one (TM, 8) logits block.
    spans = []
    for j in range(n_span):
        s = h_conv if j == 0 else jnp.where(_row_valid(TM, seq_len, j),
                                            _shift_rows(h_conv, j), 0.0)
        spans.append(s.astype(cdtype))
    logits = jnp.dot(spans[0], w_span_ref[0], preferred_element_type=jnp.float32)
    for j in range(1, n_span):
        logits = logits + jnp.dot(spans[j], w_span_ref[j],
                                  preferred_element_type=jnp.float32)
    # TODO(synk): out_w=8 < 128 lanes -> masked partial stores; a transposed
    # lane-dense (8, TM) store would avoid them, but the (TM, E) hconv stream
    # dominates HBM traffic so this is left as a low-priority follow-up.
    logits_ref[...] = (logits + b_comp).astype(logits_ref.dtype)


def make_params(key, E, H, WS):
    """Deterministic synthetic parameters (shapes per SPAN_CNN.__init__)."""
    ks = jax.random.split(key, 16)
    s = 0.05
    p = {
        "w_lin": jax.random.normal(ks[0], (E, E)) * s,
        "b_lin": jax.random.normal(ks[1], (1, E)) * s,
        "w_conv": jax.random.normal(ks[2], (WS, E, E)) * s,
        "b_conv": jax.random.normal(ks[3], (1, E)) * s,
        "w2": jax.random.normal(ks[12], (H, 2)) * s,
        "b2": jax.random.normal(ks[13], (1, 2)) * s,
    }
    for i, k in enumerate((1, 2, 3, 4)):
        p[f"w_s{k}"] = jax.random.normal(ks[4 + 2 * i], (k, E, H)) * s
        p[f"b_s{k}"] = jax.random.normal(ks[5 + 2 * i], (1, H)) * s
    return jax.tree.map(lambda a: a.astype(jnp.float32), p)


def _pack_params(params, E):
    """Fuse span filters with linear2 and pack all params into 3 buffers.

    TODO(synk): conv / span weights here use (tap, in, out) layout; a real port
    of PyTorch Conv1d weights (out, in, kernel) must transpose with (2, 1, 0).
    """
    w2, b2 = params["w2"], params["b2"]                     # (H, 2), (1, 2)
    n_span, span_out = 4, 4 * 2
    assert E >= span_out
    w_span = jnp.zeros((n_span, E, span_out), jnp.float32)
    b_comp = jnp.zeros((1, span_out), jnp.float32)
    for idx, k in enumerate((1, 2, 3, 4)):
        w_sk, b_sk = params[f"w_s{k}"], params[f"b_s{k}"]   # (k,E,H), (1,H)
        comp = jnp.einsum("jeh,ho->jeo", w_sk, w2)          # (k, E, 2)
        w_span = w_span.at[:k, :, 2 * idx:2 * idx + 2].set(comp)
        b_comp = b_comp.at[:, 2 * idx:2 * idx + 2].set(b_sk @ w2 + b2)

    # slot 0: linear weight; slots 1..WS: conv_1 taps.
    w_stack = jnp.concatenate([params["w_lin"][None], params["w_conv"]], axis=0)
    b_comp_pad = jnp.zeros((1, E), jnp.float32).at[:, :span_out].set(b_comp)
    b_stack = jnp.concatenate([params["b_lin"], params["b_conv"], b_comp_pad],
                              axis=0)                       # (3, E)
    return w_stack, b_stack, w_span


def _choose_tile_rows(batch, seq_len, target_rows=512):
    """Largest row tile that holds whole sequences, divides B*L, is a multiple
    of 8, and stays near `target_rows` (the ~85%-of-roofline sweet spot)."""
    per = max(1, target_rows // seq_len)
    best = 1
    for d in range(1, batch + 1):
        if batch % d == 0 and d <= per:
            best = d
    tm = best * seq_len
    if tm % 8 != 0:            # fall back to a single full tile if misaligned
        tm = batch * seq_len
    return tm


def span_cnn_forward(rep_word, attention_mask, params, *,
                     compute_dtype=jnp.bfloat16, tile_rows=None):
    # NOTE: in the PyTorch forward, `rep_word * attention_mask.view(...)` and
    # the stacked attention_masks are computed but never used -> no-ops; the
    # mask is accepted here only for signature parity.
    del attention_mask
    B, L, E = rep_word.shape
    WS = params["w_conv"].shape[0]
    w_stack, b_stack, w_span = _pack_params(params, E)
    n_span, out_w = w_span.shape[0], w_span.shape[2]
    M = B * L

    TM = tile_rows if tile_rows is not None else _choose_tile_rows(B, L)
    assert TM % L == 0 and M % TM == 0 and (TM % 8 == 0 or TM == M), (TM, L, M)

    x_flat = rep_word.reshape(M, E).astype(compute_dtype)
    w_stack_c = w_stack.astype(compute_dtype)
    w_span_c = w_span.astype(compute_dtype)

    kernel = functools.partial(span_cnn_kernel, seq_len=L, window_size=WS)

    itemsize = jnp.dtype(compute_dtype).itemsize
    flops = 2 * M * E * E * (1 + WS) + 2 * M * E * out_w * n_span
    bytes_accessed = (x_flat.size * itemsize + w_stack_c.size * itemsize +
                      w_span_c.size * itemsize + b_stack.size * 4 +
                      M * E * 4 + M * out_w * 4)          # HBM-visible only

    # VMEM budget: resident weights + double-buffered x / hconv / logits tiles
    # + live f32 intermediates (h_fc, h_conv, rolled taps).  Capped at 64 MiB
    # so the same setting is valid on v7x (64 MiB physical) and v5e/v6e.
    weight_bytes = (w_stack_c.size + w_span_c.size) * itemsize + b_stack.size * 4
    tile_bytes = (2 * TM * E * itemsize          # x (double-buffered)
                  + 2 * TM * E * 4               # hconv out (double-buffered)
                  + 2 * TM * out_w * 4           # logits out (double-buffered)
                  + (2 * WS + 6) * TM * E * 4)   # live intermediates headroom
    vmem_limit = int(min(max(weight_bytes + tile_bytes + (4 << 20), 32 << 20),
                         64 << 20))

    fn = pl.pallas_call(
        kernel,
        out_shape=(jax.ShapeDtypeStruct((M, E), jnp.float32),
                   jax.ShapeDtypeStruct((M, out_w), jnp.float32)),
        grid=(M // TM,),
        in_specs=[
            pl.BlockSpec((TM, E), lambda i: (i, 0)),                 # x tile
            pl.BlockSpec(w_stack_c.shape, lambda i: (0, 0, 0)),      # resident
            pl.BlockSpec(b_stack.shape, lambda i: (0, 0)),           # resident
            pl.BlockSpec(w_span_c.shape, lambda i: (0, 0, 0)),       # resident
        ],
        out_specs=(
            pl.BlockSpec((TM, E), lambda i: (i, 0)),
            pl.BlockSpec((TM, out_w), lambda i: (i, 0)),
        ),
        compiler_params=pltpu.CompilerParams(
            dimension_semantics=("parallel",),
            vmem_limit_bytes=vmem_limit),
        cost_estimate=pl.CostEstimate(flops=int(flops), transcendentals=0,
                                      bytes_accessed=int(bytes_accessed)),
    )
    hconv_flat, logits_flat = fn(x_flat, w_stack_c, b_stack, w_span_c)

    # Back to PyTorch NCL convention (tiny transposes; fused by XLA).
    h_conv = jnp.transpose(hconv_flat.reshape(B, L, E), (0, 2, 1))       # (B,E,L)
    logits = jnp.transpose(logits_flat.reshape(B, L, out_w), (0, 2, 1))  # (B,8,L)
    l1, l2, l3, l4 = (logits[:, 2 * i:2 * i + 2, :] for i in range(4))
    return h_conv, l1, l2, l3, l4


def reference_forward(rep_word, params):
    """Pure-JAX reference mirroring the PyTorch math (for correctness check)."""
    B, L, E = rep_word.shape
    h_fc = rep_word @ params["w_lin"] + params["b_lin"]
    WS = params["w_conv"].shape[0]
    pad = WS // 2
    hpad = jnp.pad(h_fc, ((0, 0), (pad, pad), (0, 0)))
    h_conv = sum(hpad[:, k:k + L, :] @ params["w_conv"][k] for k in range(WS))
    h_conv = h_conv + params["b_conv"]
    outs = [jnp.transpose(h_conv, (0, 2, 1))]
    hcp = jnp.pad(h_conv, ((0, 0), (0, 3), (0, 0)))
    for ksz in (1, 2, 3, 4):
        w, b = params[f"w_s{ksz}"], params[f"b_s{ksz}"]
        feat = sum(hcp[:, j:j + L, :] @ w[j] for j in range(ksz)) + b
        logits = feat @ params["w2"] + params["b2"]
        outs.append(jnp.transpose(logits, (0, 2, 1)))
    return tuple(outs)


if __name__ == "__main__":
    # Small config consistent with the module: MAX_SENT_LEN=16, HIDDEN_DIM=32,
    # BERT_INIT_EMBEDDING_DIM=32, WINDOW_SIZE=3, batch=2.
    B, L, E, H, WS = 2, 16, 32, 32, 3

    key = jax.random.PRNGKey(0)
    k_x, k_p = jax.random.split(key)
    rep_word = jax.random.normal(k_x, (B, L, E), dtype=jnp.float32)
    attention_mask = jnp.ones((B, L), dtype=jnp.float32)
    params = make_params(k_p, E, H, WS)

    refs = reference_forward(rep_word, params)

    # f32 matmul operands, tile_rows=16 -> 2 row tiles: strict correctness check.
    fwd_f32 = jax.jit(functools.partial(span_cnn_forward,
                                        compute_dtype=jnp.float32, tile_rows=16))
    outs = jax.block_until_ready(fwd_f32(rep_word, attention_mask, params))
    for o, r in zip(outs, refs):
        assert o.shape == r.shape, (o.shape, r.shape)
        assert jnp.allclose(o, r, atol=1e-4, rtol=1e-4), \
            float(jnp.max(jnp.abs(o - r)))

    # bf16 matmul operands (production default; ~3x MXU, half the weight/x DMA):
    # loose tolerance since the w_span@w2 pre-fusion changes rounding order.
    fwd_bf16 = jax.jit(functools.partial(span_cnn_forward,
                                         compute_dtype=jnp.bfloat16))
    outs_bf = jax.block_until_ready(fwd_bf16(rep_word, attention_mask, params))
    for o, r in zip(outs_bf, refs):
        assert o.shape == r.shape, (o.shape, r.shape)
        assert jnp.allclose(o, r, atol=5e-2, rtol=5e-2), \
            float(jnp.max(jnp.abs(o - r)))

    print("KERNEL_OK")
</pallas_src>

<mosaic_0001>
module attributes {stable_mosaic.version = 11 : i64} {
  func.func @span_cnn_kernel(%arg0: i32, %arg1: memref<16x32xf32, #tpu.memory_space<vmem>>, %arg2: memref<4x32x32xf32, #tpu.memory_space<vmem>>, %arg3: memref<3x32xf32, #tpu.memory_space<vmem>>, %arg4: memref<4x32x8xf32, #tpu.memory_space<vmem>>, %arg5: memref<16x32xf32, #tpu.memory_space<vmem>>, %arg6: memref<16x8xf32, #tpu.memory_space<vmem>>) attributes {dimension_semantics = [#tpu.dimension_semantics<parallel>], iteration_bounds = array<i64: 2>, scalar_prefetch = 0 : i64, scratch_operands = 0 : i64, tpu.core_type = #tpu.core_type<tc>, window_params = [{transform_indices = @transform_0, window_bounds = array<i64: 16, 32>}, {pipeline_mode = #tpu.pipeline_mode<synchronous>, transform_indices = @transform_1, window_bounds = array<i64: 4, 32, 32>}, {pipeline_mode = #tpu.pipeline_mode<synchronous>, transform_indices = @transform_2, window_bounds = array<i64: 3, 32>}, {pipeline_mode = #tpu.pipeline_mode<synchronous>, transform_indices = @transform_3, window_bounds = array<i64: 4, 32, 8>}, {transform_indices = @transform_4, window_bounds = array<i64: 16, 32>}, {transform_indices = @transform_5, window_bounds = array<i64: 16, 8>}]} {
    %c0 = arith.constant 0 : index
    %c0_0 = arith.constant 0 : index
    %0 = vector.load %arg3[%c0, %c0_0] : memref<3x32xf32, #tpu.memory_space<vmem>>, vector<3x32xf32>
    %1 = vector.extract_strided_slice %0 {offsets = [0, 0], sizes = [1, 32], strides = [1, 1]} : vector<3x32xf32> to vector<1x32xf32>
    %2 = vector.extract_strided_slice %0 {offsets = [1, 0], sizes = [1, 32], strides = [1, 1]} : vector<3x32xf32> to vector<1x32xf32>
    %3 = vector.extract_strided_slice %0 {offsets = [2, 0], sizes = [1, 8], strides = [1, 1]} : vector<3x32xf32> to vector<1x8xf32>
    %c0_1 = arith.constant 0 : index
    %c0_2 = arith.constant 0 : index
    %4 = vector.load %arg1[%c0_1, %c0_2] : memref<16x32xf32, #tpu.memory_space<vmem>>, vector<16x32xf32>
    %c0_3 = arith.constant 0 : index
    %c0_4 = arith.constant 0 : index
    %c0_5 = arith.constant 0 : index
    %5 = vector.load %arg2[%c0_3, %c0_4, %c0_5] : memref<4x32x32xf32, #tpu.memory_space<vmem>>, vector<1x32x32xf32>
    %6 = vector.shape_cast %5 : vector<1x32x32xf32> to vector<32x32xf32>
    %cst = arith.constant dense<0.000000e+00> : vector<16x32xf32>
    %7 = tpu.matmul %4, %6, %cst {dimension_numbers = #tpu.dot_dimension_numbers<[1], [0], [0], [1], [0, 0, 1, 1], [], []>} : vector<16x32xf32>, vector<32x32xf32>, vector<16x32xf32> -> vector<16x32xf32>
    %8 = vector.broadcast %1 : vector<1x32xf32> to vector<16x32xf32>
    %9 = arith.addf %7, %8 : vector<16x32xf32>
    %10 = tpu.iota {dimensions = array<i32: 0>} : vector<16x1xi32>
    %c16_i32 = arith.constant 16 : i32
    %c0_i32 = arith.constant 0 : i32
    %11 = arith.cmpi eq, %c16_i32, %c0_i32 : i32
    %c1_i32 = arith.constant 1 : i32
    %12 = arith.select %11, %c1_i32, %c16_i32 : i32
    %13 = vector.broadcast %12 : i32 to vector<16x1xi32>
    %14 = arith.remsi %10, %13 : vector<16x1xi32>
    %c0_i32_6 = arith.constant 0 : i32
    %15 = vector.broadcast %c0_i32_6 : i32 to vector<16x1xi32>
    %16 = arith.cmpi ne, %14, %15 : vector<16x1xi32>
    %c0_i32_7 = arith.constant 0 : i32
    %17 = vector.broadcast %c0_i32_7 : i32 to vector<16x1xi32>
    %18 = arith.cmpi slt, %14, %17 : vector<16x1xi32>
    %c0_i32_8 = arith.constant 0 : i32
    %19 = arith.cmpi slt, %12, %c0_i32_8 : i32
    %20 = vector.broadcast %19 : i1 to vector<16x1xi1>
    %21 = vector.broadcast %20 : vector<16x1xi1> to vector<16x1xi1>
    %22 = arith.xori %18, %21 : vector<16x1xi1>
    %23 = arith.andi %22, %16 : vector<16x1xi1>
    %24 = vector.broadcast %12 : i32 to vector<16x1xi32>
    %25 = arith.addi %14, %24 : vector<16x1xi32>
    %26 = arith.select %23, %25, %14 : vector<16x1xi1>, vector<16x1xi32>
    %c-1_i32 = arith.constant -1 : i32
    %27 = vector.broadcast %c-1_i32 : i32 to vector<16x1xi32>
    %28 = arith.addi %26, %27 : vector<16x1xi32>
    %c0_i32_9 = arith.constant 0 : i32
    %29 = vector.broadcast %c0_i32_9 : i32 to vector<16x1xi32>
    %30 = arith.cmpi sge, %28, %29 : vector<16x1xi32>
    %c-1_i32_10 = arith.constant -1 : i32
    %31 = vector.broadcast %c-1_i32_10 : i32 to vector<16x1xi32>
    %32 = arith.addi %26, %31 : vector<16x1xi32>
    %c15_i32 = arith.constant 15 : i32
    %33 = vector.broadcast %c15_i32 : i32 to vector<16x1xi32>
    %34 = arith.cmpi sle, %32, %33 : vector<16x1xi32>
    %35 = arith.andi %30, %34 : vector<16x1xi1>
    %c1_i32_11 = arith.constant 1 : i32
    %36 = tpu.dynamic_rotate %9 by %c1_i32_11 dim 0 : vector<16x32xf32>, i32 -> vector<16x32xf32>
    %cst_12 = arith.constant 0.000000e+00 : f32
    %37 = vector.shape_cast %35 : vector<16x1xi1> to vector<16x1xi1>
    %38 = vector.broadcast %37 : vector<16x1xi1> to vector<16x32xi1>
    %39 = vector.broadcast %cst_12 : f32 to vector<16x32xf32>
    %40 = arith.select %38, %36, %39 : vector<16x32xi1>, vector<16x32xf32>
    %41 = tpu.iota {dimensions = array<i32: 0>} : vector<16x1xi32>
    %c16_i32_13 = arith.constant 16 : i32
    %c0_i32_14 = arith.constant 0 : i32
    %42 = arith.cmpi eq, %c16_i32_13, %c0_i32_14 : i32
    %c1_i32_15 = arith.constant 1 : i32
    %43 = arith.select %42, %c1_i32_15, %c16_i32_13 : i32
    %44 = vector.broadcast %43 : i32 to vector<16x1xi32>
    %45 = arith.remsi %41, %44 : vector<16x1xi32>
    %c0_i32_16 = arith.constant 0 : i32
    %46 = vector.broadcast %c0_i32_16 : i32 to vector<16x1xi32>
    %47 = arith.cmpi ne, %45, %46 : vector<16x1xi32>
    %c0_i32_17 = arith.constant 0 : i32
    %48 = vector.broadcast %c0_i32_17 : i32 to vector<16x1xi32>
    %49 = arith.cmpi slt, %45, %48 : vector<16x1xi32>
    %c0_i32_18 = arith.constant 0 : i32
    %50 = arith.cmpi slt, %43, %c0_i32_18 : i32
    %51 = vector.broadcast %50 : i1 to vector<16x1xi1>
    %52 = vector.broadcast %51 : vector<16x1xi1> to vector<16x1xi1>
    %53 = arith.xori %49, %52 : vector<16x1xi1>
    %54 = arith.andi %53, %47 : vector<16x1xi1>
    %55 = vector.broadcast %43 : i32 to vector<16x1xi32>
    %56 = arith.addi %45, %55 : vector<16x1xi32>
    %57 = arith.select %54, %56, %45 : vector<16x1xi1>, vector<16x1xi32>
    %c1_i32_19 = arith.constant 1 : i32
    %58 = vector.broadcast %c1_i32_19 : i32 to vector<16x1xi32>
    %59 = arith.addi %57, %58 : vector<16x1xi32>
    %c0_i32_20 = arith.constant 0 : i32
    %60 = vector.broadcast %c0_i32_20 : i32 to vector<16x1xi32>
    %61 = arith.cmpi sge, %59, %60 : vector<16x1xi32>
    %c1_i32_21 = arith.constant 1 : i32
    %62 = vector.broadcast %c1_i32_21 : i32 to vector<16x1xi32>
    %63 = arith.addi %57, %62 : vector<16x1xi32>
    %c15_i32_22 = arith.constant 15 : i32
    %64 = vector.broadcast %c15_i32_22 : i32 to vector<16x1xi32>
    %65 = arith.cmpi sle, %63, %64 : vector<16x1xi32>
    %66 = arith.andi %61, %65 : vector<16x1xi1>
    %c15_i32_23 = arith.constant 15 : i32
    %67 = tpu.dynamic_rotate %9 by %c15_i32_23 dim 0 : vector<16x32xf32>, i32 -> vector<16x32xf32>
    %cst_24 = arith.constant 0.000000e+00 : f32
    %68 = vector.shape_cast %66 : vector<16x1xi1> to vector<16x1xi1>
    %69 = vector.broadcast %68 : vector<16x1xi1> to vector<16x32xi1>
    %70 = vector.broadcast %cst_24 : f32 to vector<16x32xf32>
    %71 = arith.select %69, %67, %70 : vector<16x32xi1>, vector<16x32xf32>
    %c1 = arith.constant 1 : index
    %c0_25 = arith.constant 0 : index
    %c0_26 = arith.constant 0 : index
    %72 = vector.load %arg2[%c1, %c0_25, %c0_26] : memref<4x32x32xf32, #tpu.memory_space<vmem>>, vector<1x32x32xf32>
    %73 = vector.shape_cast %72 : vector<1x32x32xf32> to vector<32x32xf32>
    %cst_27 = arith.constant dense<0.000000e+00> : vector<16x32xf32>
    %74 = tpu.matmul %40, %73, %cst_27 {dimension_numbers = #tpu.dot_dimension_numbers<[1], [0], [0], [1], [0, 0, 1, 1], [], []>} : vector<16x32xf32>, vector<32x32xf32>, vector<16x32xf32> -> vector<16x32xf32>
    %c2 = arith.constant 2 : index
    %c0_28 = arith.constant 0 : index
    %c0_29 = arith.constant 0 : index
    %75 = vector.load %arg2[%c2, %c0_28, %c0_29] : memref<4x32x32xf32, #tpu.memory_space<vmem>>, vector<1x32x32xf32>
    %76 = vector.shape_cast %75 : vector<1x32x32xf32> to vector<32x32xf32>
    %cst_30 = arith.constant dense<0.000000e+00> : vector<16x32xf32>
    %77 = tpu.matmul %9, %76, %cst_30 {dimension_numbers = #tpu.dot_dimension_numbers<[1], [0], [0], [1], [0, 0, 1, 1], [], []>} : vector<16x32xf32>, vector<32x32xf32>, vector<16x32xf32> -> vector<16x32xf32>
    %78 = arith.addf %74, %77 : vector<16x32xf32>
    %c3 = arith.constant 3 : index
    %c0_31 = arith.constant 0 : index
    %c0_32 = arith.constant 0 : index
    %79 = vector.load %arg2[%c3, %c0_31, %c0_32] : memref<4x32x32xf32, #tpu.memory_space<vmem>>, vector<1x32x32xf32>
    %80 = vector.shape_cast %79 : vector<1x32x32xf32> to vector<32x32xf32>
    %cst_33 = arith.constant dense<0.000000e+00> : vector<16x32xf32>
    %81 = tpu.matmul %71, %80, %cst_33 {dimension_numbers = #tpu.dot_dimension_numbers<[1], [0], [0], [1], [0, 0, 1, 1], [], []>} : vector<16x32xf32>, vector<32x32xf32>, vector<16x32xf32> -> vector<16x32xf32>
    %82 = arith.addf %78, %81 : vector<16x32xf32>
    %83 = vector.broadcast %2 : vector<1x32xf32> to vector<16x32xf32>
    %84 = arith.addf %82, %83 : vector<16x32xf32>
    %c0_34 = arith.constant 0 : index
    %c0_35 = arith.constant 0 : index
    %85 = vector.load %arg5[%c0_34, %c0_35] : memref<16x32xf32, #tpu.memory_space<vmem>>, vector<16x32xf32>
    tpu.vector_store %arg5[%c0_34, %c0_35], %84 {strides = array<i32>} : memref<16x32xf32, #tpu.memory_space<vmem>>, vector<16x32xf32>,
    %86 = tpu.iota {dimensions = array<i32: 0>} : vector<16x1xi32>
    %c16_i32_36 = arith.constant 16 : i32
    %c0_i32_37 = arith.constant 0 : i32
    %87 = arith.cmpi eq, %c16_i32_36, %c0_i32_37 : i32
    %c1_i32_38 = arith.constant 1 : i32
    %88 = arith.select %87, %c1_i32_38, %c16_i32_36 : i32
    %89 = vector.broadcast %88 : i32 to vector<16x1xi32>
    %90 = arith.remsi %86, %89 : vector<16x1xi32>
    %c0_i32_39 = arith.constant 0 : i32
    %91 = vector.broadcast %c0_i32_39 : i32 to vector<16x1xi32>
    %92 = arith.cmpi ne, %90, %91 : vector<16x1xi32>
    %c0_i32_40 = arith.constant 0 : i32
    %93 = vector.broadcast %c0_i32_40 : i32 to vector<16x1xi32>
    %94 = arith.cmpi slt, %90, %93 : vector<16x1xi32>
    %c0_i32_41 = arith.constant 0 : i32
    %95 = arith.cmpi slt, %88, %c0_i32_41 : i32
    %96 = vector.broadcast %95 : i1 to vector<16x1xi1>
    %97 = vector.broadcast %96 : vector<16x1xi1> to vector<16x1xi1>
    %98 = arith.xori %94, %97 : vector<16x1xi1>
    %99 = arith.andi %98, %92 : vector<16x1xi1>
    %100 = vector.broadcast %88 : i32 to vector<16x1xi32>
    %101 = arith.addi %90, %100 : vector<16x1xi32>
    %102 = arith.select %99, %101, %90 : vector<16x1xi1>, vector<16x1xi32>
    %c1_i32_42 = arith.constant 1 : i32
    %103 = vector.broadcast %c1_i32_42 : i32 to vector<16x1xi32>
    %104 = arith.addi %102, %103 : vector<16x1xi32>
    %c0_i32_43 = arith.constant 0 : i32
    %105 = vector.broadcast %c0_i32_43 : i32 to vector<16x1xi32>
    %106 = arith.cmpi sge, %104, %105 : vector<16x1xi32>
    %c1_i32_44 = arith.constant 1 : i32
    %107 = vector.broadcast %c1_i32_44 : i32 to vector<16x1xi32>
    %108 = arith.addi %102, %107 : vector<16x1xi32>
    %c15_i32_45 = arith.constant 15 : i32
    %109 = vector.broadcast %c15_i32_45 : i32 to vector<16x1xi32>
    %110 = arith.cmpi sle, %108, %109 : vector<16x1xi32>
    %111 = arith.andi %106, %110 : vector<16x1xi1>
    %c15_i32_46 = arith.constant 15 : i32
    %112 = tpu.dynamic_rotate %84 by %c15_i32_46 dim 0 : vector<16x32xf32>, i32 -> vector<16x32xf32>
    %cst_47 = arith.constant 0.000000e+00 : f32
    %113 = vector.shape_cast %111 : vector<16x1xi1> to vector<16x1xi1>
    %114 = vector.broadcast %113 : vector<16x1xi1> to vector<16x32xi1>
    %115 = vector.broadcast %cst_47 : f32 to vector<16x32xf32>
    %116 = arith.select %114, %112, %115 : vector<16x32xi1>, vector<16x32xf32>
    %117 = tpu.iota {dimensions = array<i32: 0>} : vector<16x1xi32>
    %c16_i32_48 = arith.constant 16 : i32
    %c0_i32_49 = arith.constant 0 : i32
    %118 = arith.cmpi eq, %c16_i32_48, %c0_i32_49 : i32
    %c1_i32_50 = arith.constant 1 : i32
    %119 = arith.select %118, %c1_i32_50, %c16_i32_48 : i32
    %120 = vector.broadcast %119 : i32 to vector<16x1xi32>
    %121 = arith.remsi %117, %120 : vector<16x1xi32>
    %c0_i32_51 = arith.constant 0 : i32
    %122 = vector.broadcast %c0_i32_51 : i32 to vector<16x1xi32>
    %123 = arith.cmpi ne, %121, %122 : vector<16x1xi32>
    %c0_i32_52 = arith.constant 0 : i32
    %124 = vector.broadcast %c0_i32_52 : i32 to vector<16x1xi32>
    %125 = arith.cmpi slt, %121, %124 : vector<16x1xi32>
    %c0_i32_53 = arith.constant 0 : i32
    %126 = arith.cmpi slt, %119, %c0_i32_53 : i32
    %127 = vector.broadcast %126 : i1 to vector<16x1xi1>
    %128 = vector.broadcast %127 : vector<16x1xi1> to vector<16x1xi1>
    %129 = arith.xori %125, %128 : vector<16x1xi1>
    %130 = arith.andi %129, %123 : vector<16x1xi1>
    %131 = vector.broadcast %119 : i32 to vector<16x1xi32>
    %132 = arith.addi %121, %131 : vector<16x1xi32>
    %133 = arith.select %130, %132, %121 : vector<16x1xi1>, vector<16x1xi32>
    %c2_i32 = arith.constant 2 : i32
    %134 = vector.broadcast %c2_i32 : i32 to vector<16x1xi32>
    %135 = arith.addi %133, %134 : vector<16x1xi32>
    %c0_i32_54 = arith.constant 0 : i32
    %136 = vector.broadcast %c0_i32_54 : i32 to vector<16x1xi32>
    %137 = arith.cmpi sge, %135, %136 : vector<16x1xi32>
    %c2_i32_55 = arith.constant 2 : i32
    %138 = vector.broadcast %c2_i32_55 : i32 to vector<16x1xi32>
    %139 = arith.addi %133, %138 : vector<16x1xi32>
    %c15_i32_56 = arith.constant 15 : i32
    %140 = vector.broadcast %c15_i32_56 : i32 to vector<16x1xi32>
    %141 = arith.cmpi sle, %139, %140 : vector<16x1xi32>
    %142 = arith.andi %137, %141 : vector<16x1xi1>
    %c14_i32 = arith.constant 14 : i32
    %143 = tpu.dynamic_rotate %84 by %c14_i32 dim 0 : vector<16x32xf32>, i32 -> vector<16x32xf32>
    %cst_57 = arith.constant 0.000000e+00 : f32
    %144 = vector.shape_cast %142 : vector<16x1xi1> to vector<16x1xi1>
    %145 = vector.broadcast %144 : vector<16x1xi1> to vector<16x32xi1>
    %146 = vector.broadcast %cst_57 : f32 to vector<16x32xf32>
    %147 = arith.select %145, %143, %146 : vector<16x32xi1>, vector<16x32xf32>
    %148 = tpu.iota {dimensions = array<i32: 0>} : vector<16x1xi32>
    %c16_i32_58 = arith.constant 16 : i32
    %c0_i32_59 = arith.constant 0 : i32
    %149 = arith.cmpi eq, %c16_i32_58, %c0_i32_59 : i32
    %c1_i32_60 = arith.constant 1 : i32
    %150 = arith.select %149, %c1_i32_60, %c16_i32_58 : i32
    %151 = vector.broadcast %150 : i32 to vector<16x1xi32>
    %152 = arith.remsi %148, %151 : vector<16x1xi32>
    %c0_i32_61 = arith.constant 0 : i32
    %153 = vector.broadcast %c0_i32_61 : i32 to vector<16x1xi32>
    %154 = arith.cmpi ne, %152, %153 : vector<16x1xi32>
    %c0_i32_62 = arith.constant 0 : i32
    %155 = vector.broadcast %c0_i32_62 : i32 to vector<16x1xi32>
    %156 = arith.cmpi slt, %152, %155 : vector<16x1xi32>
    %c0_i32_63 = arith.constant 0 : i32
    %157 = arith.cmpi slt, %150, %c0_i32_63 : i32
    %158 = vector.broadcast %157 : i1 to vector<16x1xi1>
    %159 = vector.broadcast %158 : vector<16x1xi1> to vector<16x1xi1>
    %160 = arith.xori %156, %159 : vector<16x1xi1>
    %161 = arith.andi %160, %154 : vector<16x1xi1>
    %162 = vector.broadcast %150 : i32 to vector<16x1xi32>
    %163 = arith.addi %152, %162 : vector<16x1xi32>
    %164 = arith.select %161, %163, %152 : vector<16x1xi1>, vector<16x1xi32>
    %c3_i32 = arith.constant 3 : i32
    %165 = vector.broadcast %c3_i32 : i32 to vector<16x1xi32>
    %166 = arith.addi %164, %165 : vector<16x1xi32>
    %c0_i32_64 = arith.constant 0 : i32
    %167 = vector.broadcast %c0_i32_64 : i32 to vector<16x1xi32>
    %168 = arith.cmpi sge, %166, %167 : vector<16x1xi32>
    %c3_i32_65 = arith.constant 3 : i32
    %169 = vector.broadcast %c3_i32_65 : i32 to vector<16x1xi32>
    %170 = arith.addi %164, %169 : vector<16x1xi32>
    %c15_i32_66 = arith.constant 15 : i32
    %171 = vector.broadcast %c15_i32_66 : i32 to vector<16x1xi32>
    %172 = arith.cmpi sle, %170, %171 : vector<16x1xi32>
    %173 = arith.andi %168, %172 : vector<16x1xi1>
    %c13_i32 = arith.constant 13 : i32
    %174 = tpu.dynamic_rotate %84 by %c13_i32 dim 0 : vector<16x32xf32>, i32 -> vector<16x32xf32>
    %cst_67 = arith.constant 0.000000e+00 : f32
    %175 = vector.shape_cast %173 : vector<16x1xi1> to vector<16x1xi1>
    %176 = vector.broadcast %175 : vector<16x1xi1> to vector<16x32xi1>
    %177 = vector.broadcast %cst_67 : f32 to vector<16x32xf32>
    %178 = arith.select %176, %174, %177 : vector<16x32xi1>, vector<16x32xf32>
    %c0_68 = arith.constant 0 : index
    %c0_69 = arith.constant 0 : index
    %c0_70 = arith.constant 0 : index
    %179 = vector.load %arg4[%c0_68, %c0_69, %c0_70] : memref<4x32x8xf32, #tpu.memory_space<vmem>>, vector<1x32x8xf32>
    %180 = vector.shape_cast %179 : vector<1x32x8xf32> to vector<32x8xf32>
    %cst_71 = arith.constant dense<0.000000e+00> : vector<16x8xf32>
    %181 = tpu.matmul %84, %180, %cst_71 {dimension_numbers = #tpu.dot_dimension_numbers<[1], [0], [0], [1], [0, 0, 1, 1], [], []>} : vector<16x32xf32>, vector<32x8xf32>, vector<16x8xf32> -> vector<16x8xf32>
    %c1_72 = arith.constant 1 : index
    %c0_73 = arith.constant 0 : index
    %c0_74 = arith.constant 0 : index
    %182 = vector.load %arg4[%c1_72, %c0_73, %c0_74] : memref<4x32x8xf32, #tpu.memory_space<vmem>>, vector<1x32x8xf32>
    %183 = vector.shape_cast %182 : vector<1x32x8xf32> to vector<32x8xf32>
    %cst_75 = arith.constant dense<0.000000e+00> : vector<16x8xf32>
    %184 = tpu.matmul %116, %183, %cst_75 {dimension_numbers = #tpu.dot_dimension_numbers<[1], [0], [0], [1], [0, 0, 1, 1], [], []>} : vector<16x32xf32>, vector<32x8xf32>, vector<16x8xf32> -> vector<16x8xf32>
    %185 = arith.addf %181, %184 : vector<16x8xf32>
    %c2_76 = arith.constant 2 : index
    %c0_77 = arith.constant 0 : index
    %c0_78 = arith.constant 0 : index
    %186 = vector.load %arg4[%c2_76, %c0_77, %c0_78] : memref<4x32x8xf32, #tpu.memory_space<vmem>>, vector<1x32x8xf32>
    %187 = vector.shape_cast %186 : vector<1x32x8xf32> to vector<32x8xf32>
    %cst_79 = arith.constant dense<0.000000e+00> : vector<16x8xf32>
    %188 = tpu.matmul %147, %187, %cst_79 {dimension_numbers = #tpu.dot_dimension_numbers<[1], [0], [0], [1], [0, 0, 1, 1], [], []>} : vector<16x32xf32>, vector<32x8xf32>, vector<16x8xf32> -> vector<16x8xf32>
    %189 = arith.addf %185, %188 : vector<16x8xf32>
    %c3_80 = arith.constant 3 : index
    %c0_81 = arith.constant 0 : index
    %c0_82 = arith.constant 0 : index
    %190 = vector.load %arg4[%c3_80, %c0_81, %c0_82] : memref<4x32x8xf32, #tpu.memory_space<vmem>>, vector<1x32x8xf32>
    %191 = vector.shape_cast %190 : vector<1x32x8xf32> to vector<32x8xf32>
    %cst_83 = arith.constant dense<0.000000e+00> : vector<16x8xf32>
    %192 = tpu.matmul %178, %191, %cst_83 {dimension_numbers = #tpu.dot_dimension_numbers<[1], [0], [0], [1], [0, 0, 1, 1], [], []>} : vector<16x32xf32>, vector<32x8xf32>, vector<16x8xf32> -> vector<16x8xf32>
    %193 = arith.addf %189, %192 : vector<16x8xf32>
    %194 = vector.broadcast %3 : vector<1x8xf32> to vector<16x8xf32>
    %195 = arith.addf %193, %194 : vector<16x8xf32>
    %c0_84 = arith.constant 0 : index
    %c0_85 = arith.constant 0 : index
    %196 = vector.load %arg6[%c0_84, %c0_85] : memref<16x8xf32, #tpu.memory_space<vmem>>, vector<16x8xf32>
    tpu.vector_store %arg6[%c0_84, %c0_85], %195 {strides = array<i32>} : memref<16x8xf32, #tpu.memory_space<vmem>>, vector<16x8xf32>,
    return
  }
  func.func @transform_0(%arg0: i32) -> (i32, i32) {
    %c0_i32 = arith.constant 0 : i32
    %c0_i32_0 = arith.constant 0 : i32
    return %arg0, %c0_i32 : i32, i32
  }
  func.func @transform_1(%arg0: i32) -> (i32, i32, i32) {
    %c0_i32 = arith.constant 0 : i32
    %c0_i32_0 = arith.constant 0 : i32
    %c0_i32_1 = arith.constant 0 : i32
    %c0_i32_2 = arith.constant 0 : i32
    return %c0_i32, %c0_i32_0, %c0_i32_1 : i32, i32, i32
  }
  func.func @transform_2(%arg0: i32) -> (i32, i32) {
    %c0_i32 = arith.constant 0 : i32
    %c0_i32_0 = arith.constant 0 : i32
    %c0_i32_1 = arith.constant 0 : i32
    return %c0_i32, %c0_i32_0 : i32, i32
  }
  func.func @transform_3(%arg0: i32) -> (i32, i32, i32) {
    %c0_i32 = arith.constant 0 : i32
    %c0_i32_0 = arith.constant 0 : i32
    %c0_i32_1 = arith.constant 0 : i32
    %c0_i32_2 = arith.constant 0 : i32
    return %c0_i32, %c0_i32_0, %c0_i32_1 : i32, i32, i32
  }
  func.func @transform_4(%arg0: i32) -> (i32, i32) {
    %c0_i32 = arith.constant 0 : i32
    %c0_i32_0 = arith.constant 0 : i32
    return %arg0, %c0_i32 : i32, i32
  }
  func.func @transform_5(%arg0: i32) -> (i32, i32) {
    %c0_i32 = arith.constant 0 : i32
    %c0_i32_0 = arith.constant 0 : i32
    return %arg0, %c0_i32 : i32, i32
  }
}

</mosaic_0001>

<bundles_post_ra>
// kernel: span_cnn_forward.1
= control target key start
LH: loop header
LB: loop body
LE: loop exit
PB: predicated region body
PF: predicated region fallthrough
CT: control target
= control target key end

     0   :  { %11 = vsyncpa [#allocation3], 0  ;;  %s1210_s0 = inlined_call_operand.vmem [shape: f32[32,32], index: 0, kind: input, shape index: {}]   ;;  %s1211_s1 = inlined_call_operand.vmem [shape: f32[4,32,32], index: 1, kind: input, shape index: {}]   ;;  %s1212_s2 = inlined_call_operand.vmem [shape: f32[3,32], index: 2, kind: input, shape index: {}]   ;;  %s1213_s3 = inlined_call_operand.vmem [shape: f32[4,32,8], index: 3, kind: input, shape index: {}]   ;;  %s1214_s4 = inlined_call_operand.hbm [shape: f32[32,32], index: 4, kind: output, shape index: {0}]   ;;  %s1215_s5 = inlined_call_operand.vmem [shape: f32[32,8], index: 5, kind: output, shape index: {1}]  }
   0x1   :  { %13 = vsyncpa [#allocation3 + $0x1], 0  ;;  %s945_s18 = smov 0   ;;  %s947_s19 = smov 0  }
   0x2   :  { %s949_s20 = smov 0   ;;  %s951_s21 = smov 0  }
   0x3 LB: > { %s966_s22 = sadd.s32 4294967295, %s911_s21   ;;  %s753_s23 = sadd.s32 4294967294, %s911_s21   ;;  %s911_s21 = sphi %s951_s21, %s1221_s21   ;;  %s907_s20 = sphi %s949_s20, %s1220_s20   ;;  %s903_s19 = sphi %s947_s19, %s1219_s19   ;;  %s899_s18 = sphi %s945_s18, %s1218_s18  }
   0x4   : > { %s970_s24 = sadd.s32 1, %s911_s21   ;;  %s115_s25 = sadd.s32 1, %s907_s20 }
   0x5   : > { %s112_s26 = ssub.s32 %s911_s21, %s970_s24  ;;  %p125_p0 = scmp.ne.s32.totalorder %s907_s20, %s903_s19 }
   0x6   : > { %p113_p1 = scmp.eq.s32.totalorder %s112_s26, 0  ;;  %p126_p2 = scmp.eq.s32.totalorder %s966_s22, 1 }
   0x7   : > { %p131_p3 = scmp.ne.s32.totalorder %s903_s19, %s899_s18  ;;  %p132_p4 = scmp.eq.s32.totalorder %s753_s23, 1 }
   0x8   : > { %s981_s27 = scalar_select %p113_p1, %s907_s20, %s115_s25  }
   0x9   : > { %p983_p5 = por %p126_p2, %p125_p0  ;;  %p987_p6 = por %p132_p4, %p131_p3 }
   0xa   : > { %p756_p7 = scmp.ge.s32.totalorder %s911_s21, 1  ;;  %p194_p8 = scmp.lt.s32.totalorder %s911_s21, 3 }
   0xc   : > { %p195_p9 = pnand %p756_p7, %p194_p8 }
   0xd   : > { %s758_s9 = sshll.u32 (!%p195_p9), %s966_s22, 1  ;;  %s217_s26 = sand.u32 (!%p195_p9), 1, %s903_s19  }
   0xe   : > { %198 = sbr.rel (%p195_p9) target bundleno = 463 (0x1cf), region = 36  ;;  %p228_p10 = scmp.lt.s32.totalorder (!%p195_p9), %s758_s9, 3 }
   0xf   : > { %s807_s7 = sshll.u32 (!%p195_p9), %s966_s22, 4  ;;  %s642_s14 = scalar_lea.sflag (!%p195_p9), [#allocation3], %s217_s26 }
  0x10   : > { %s658_s11 = scalar_lea.hbm (!%p195_p9), %s1214_s4, %s807_s7  ;;  %s869_s22 = scalar_lea.hbm (!%p195_p9), %s1214_s4, 32 }
  0x11   : > { %s661_s13 = sshll.u32 (!%p195_p9), %s658_s11, 4  ;;  %s662_s13 = int_to_ptr.hbm [resolvable:$true] %s661_s13 }
  0x12   : > { %s863_s15 = sshra.s32 (!%p195_p9), %s662_s13, 4  ;;  %s864_s15 = int_to_ptr.hbm [resolvable:$true] %s863_s15 }
  0x13   : > { %v246_v0 = vld [vmem:[%s1211_s1 + $0x18] sm:$0xff]  ;;  %v245_v1 = vld [vmem:[%s1211_s1 + $0x10] sm:$0xff]  ;;  %v244_v4 = vld [vmem:[%s1211_s1 + $0x8] sm:$0xff]  ;;  %s1223_s9 = smov (!%p228_p10, %s758_s9), 3  ;;  %vm248_vm0 = vcmask 261120   ;;  %v278_v19 = vlaneseq  ;;  %s865_s16 = scalar_lea.hbm %s864_s15, 16 }
  0x14   : > { %267 = vmatpush.msra.mxu0 %v246_v0  ;;  %v771_v2 = vld [vmem:[%s1211_s1 + $0x58] sm:$0xff]  ;;  %v770_v3 = vld [vmem:[%s1211_s1 + $0x50] sm:$0xff]  ;;  %v243_v5 = vld [vmem:[%s1211_s1] sm:$0xff]  ;;  %s759_s23 = sshll.u32 %s1223_s9, 3  ;;  %p866_p11 = scmp.ne.s32.totalorder %s864_s15, %s865_s16 }
  0x15   : > { %371 = vmatpush.msra.mxu1 %v771_v2  ;;  %s231_s30 = scalar_lea.vmem %s1210_s0, %s759_s23  ;;  %v769_v8 = vld [vmem:[%s1211_s1 + $0x48] sm:$0xff]  ;;  %v768_v9 = vld [vmem:[%s1211_s1 + $0x40] sm:$0xff]  ;;  %v779_v10 = vld [vmem:[%s1211_s1 + $0x78] sm:$0xff]  ;;  %v1058_v22 = vshrl.u32 %v278_v19, 7  ;;  %p870_p0 = scmp.lt.s32.totalorder %s864_s15, %s1214_s4 }
  0x16   : > { %268 = vmatpush.msra.mxu0 %v245_v1  ;;  %v241_v6 = vld [vmem:[%s231_s30] sm:$0xff]  ;;  %v242_v7 = vld [vmem:[%s231_s30 + $0x8] sm:$0xff]  ;;  %434 = vmatpush.msra.mxu3 %v779_v10  ;;  %v767_v11 = vld [vmem:[%s1211_s1 + $0x38] sm:$0xff]  ;;  %s757_s30 = sshll.u32 %s217_s26, 4  ;;  %p867_p12 = pnand %p866_p11, %p983_p5 }
  0x17   : > { %372 = vmatpush.msra.mxu1 %v770_v3  ;;  %400 = vmatpush.msra.mxu2 %v767_v11  ;;  %v778_v12 = vld [vmem:[%s1211_s1 + $0x70] sm:$0xff]  ;;  %v777_v14 = vld [vmem:[%s1211_s1 + $0x68] sm:$0xff]  ;;  %v776_v16 = vld [vmem:[%s1211_s1 + $0x60] sm:$0xff]  ;;  %v285_v24 = vand.u32 15, %v1058_v22  ;;  %v280_v26 = vadd.s32 8, %v1058_v22  ;;  %vm334_vm1 = vcmp.lt.s32.totalorder %v1058_v22, 7  ;;  %p871_p1 = scmp.lt.s32.totalorder %s869_s22, %s865_s16 }
  0x18   : > { %269 = vmatpush.msra.mxu0 %v244_v4  ;;  %435 = vmatpush.msra.mxu3 %v778_v12  ;;  %v766_v13 = vld [vmem:[%s1211_s1 + $0x30] sm:$0xff]  ;;  %v765_v15 = vld [vmem:[%s1211_s1 + $0x28] sm:$0xff]  ;;  %v764_v17 = vld [vmem:[%s1211_s1 + $0x20] sm:$0xff]  ;;  %vm315_vm3 = vcmp.lt.s32.totalorder %v1058_v22, 1  ;;  %s1139_s6 = scalar_lea.vmem [#allocation2], %s757_s30  ;;  %vm468_vm5 = vcmp.lt.s32.totalorder %v1058_v22, 6  ;;  %p868_p13 = pneg %p867_p12 }
  0x19   : > { %373 = vmatpush.msra.mxu1 %v769_v8  ;;  %401 = vmatpush.msra.mxu2 %v766_v13  ;;  %v1055_v18 = vld [vmem:[%s1212_s2] sm:$0x7]  ;;  %v305_v25 = vadd.s32 4294967295, %v285_v24  ;;  %v1065_v29 = vand.u32 15, %v280_v26  ;;  %v499_v41 = vld [vmem:[%s1213_s3 + $0x18] sm:$0xff]  ;;  %v498_v42 = vld [vmem:[%s1213_s3 + $0x10] sm:$0xff]  ;;  %p872_p2 = por %p871_p1, %p870_p0 }
  0x1a   : > { %270 = vmatpush.msra.mxu0 %v243_v5  ;;  %436 = vmatpush.msra.mxu3 %v777_v14  ;;  %v247_v20 = vperm.slane %v1055_v18, 0  ;;  %v497_v43 = vld [vmem:[%s1213_s3 + $0x8] sm:$0xff]  ;;  %v793_v44 = vld [vmem:[%s1213_s3 + $0x58] sm:$0xff]  ;;  %v496_v47 = vld [vmem:[%s1213_s3] sm:$0xff]  ;;  %v447_v61 = vperm.slane %v1055_v18, 1  ;;  %vm487_vm6 = vcmp.lt.s32.totalorder %v1058_v22, 5 }
  0x1b   : > { %762 = vmatmul.msk.f32.vlgmr.msra.gmra.mxu0 %vm248_vm0, %v241_v6  ;;  %374 = vmatpush.msra.mxu1 %v768_v9  ;;  %vm307_vm2 = vcmp.ge.s32.totalorder %v305_v25, 0  ;;  %v1074_v37 = vadd.s32 1, %v1065_v29  ;;  %v799_v45 = vld [vmem:[%s1213_s3 + $0x78] sm:$0xff]  ;;  %v792_v48 = vld [vmem:[%s1213_s3 + $0x50] sm:$0xff]  ;;  %v791_v51 = vld [vmem:[%s1213_s3 + $0x48] sm:$0xff]  ;;  %s659_s12 = sshll.u32 %s1139_s6, 4  ;;  %p873_p3 = pnand %p872_p2, %p868_p13  ;;  %s660_s12 = int_to_ptr.vmem [resolvable:$true] %s659_s12 }
  0x1c   : > { %402 = vmatpush.msra.mxu2 %v765_v15  ;;  %437 = vmatpush.msra.mxu3 %v776_v16  ;;  %v785_v46 = vld [vmem:[%s1213_s3 + $0x38] sm:$0xff]  ;;  %v798_v49 = vld [vmem:[%s1213_s3 + $0x70] sm:$0xff]  ;;  %v797_v52 = vld [vmem:[%s1213_s3 + $0x68] sm:$0xff]  ;;  %v459_v15 = vadd.s32 2, %v1065_v29  ;;  %v478_v16 = vadd.s32 3, %v1065_v29 }
  0x1d   : > { %vm329_vm4 = vcmp.le.s32.totalorder %v1074_v37, 15  ;;  %552 = vmatpush.msrb.mxu1 %v499_v41  ;;  %523 = vmatpush.msrb.mxu0 %v785_v46  ;;  %v784_v50 = vld [vmem:[%s1213_s3 + $0x30] sm:$0xff]  ;;  %v783_v53 = vld [vmem:[%s1213_s3 + $0x28] sm:$0xff]  ;;  %v790_v54 = vld [vmem:[%s1213_s3 + $0x40] sm:$0xff] }
  0x1e   : > { %403 = vmatpush.msra.mxu2 %v764_v17  ;;  %622 = vmatpush.msrb.mxu3 %v799_v45  ;;  %v796_v55 = vld [vmem:[%s1213_s3 + $0x60] sm:$0xff]  ;;  %vm463_vm7 = vcmp.le.s32.totalorder %v459_v15, 15  ;;  %vm482_vm8 = vcmp.le.s32.totalorder %v478_v16, 15 }
  0x1f   : > { %553 = vmatpush.msrb.mxu1 %v498_v42  ;;  %524 = vmatpush.msrb.mxu0 %v784_v50  ;;  %v782_v56 = vld [vmem:[%s1213_s3 + $0x20] sm:$0xff] }
  0x20   : > { %586 = vmatpush.msrb.mxu2 %v793_v44  ;;  %623 = vmatpush.msrb.mxu3 %v798_v49 }
  0x21   : > { %554 = vmatpush.msrb.mxu1 %v497_v43  ;;  %525 = vmatpush.msrb.mxu0 %v783_v53 }
  0x22   : > { %587 = vmatpush.msrb.mxu2 %v792_v48  ;;  %624 = vmatpush.msrb.mxu3 %v797_v52 }
  0x23   : > { %763 = vmatmul.msk.f32.gmra.mxu0 %vm248_vm0, %v242_v7  ;;  %555 = vmatpush.msrb.mxu1 %v496_v47 }
  0x24   : > { %588 = vmatpush.msrb.mxu2 %v791_v51  ;;  %625 = vmatpush.msrb.mxu3 %v796_v55 }
  0x25   : > { %526 = vmatpush.msrb.mxu0 %v782_v56 }
  0x26   : > { %589 = vmatpush.msrb.mxu2 %v790_v54 }
  0x98   : > { %v272_v21 = vpop.f32.mrf.mxu0 }
  0x99   : > { %v273_v23 = vadd.f32 %v272_v21, %v247_v20 }
  0x9b   : > { %772 = vmatmul.msk.f32.vlgmr.msra.gmra.mxu1 %vm248_vm0, %v273_v23  ;;  %v313_v30 = vrot.slane %v273_v23, 7  ;;  %v332_v31 = vrot.slane %v273_v23, 1 }
  0xa0   : > { %v275_v27 = vpop.f32.mrf.mxu0 }
  0xa1   : > { %v276_v28 = vadd.f32 %v275_v27, %v247_v20 }
  0xa3   : > { %v314_v32 = vrot.slane %v276_v28, 7  ;;  %v333_v33 = vrot.slane %v276_v28, 1  ;;  %773 = vmatmul.msk.f32.gmra.mxu1 %vm248_vm0, %v276_v28 }
  0xa5   : > { %v335_v34 = vsel %vm334_vm1, %v332_v31, %v333_v33  ;;  %v317_v35 = vsel %vm315_vm3, %v314_v32, %v313_v30  ;;  %v336_v38 = vsel %vm334_vm1, %v333_v33, %v332_v31  ;;  %v316_v40 = vsel %vm315_vm3, %v313_v30, %v314_v32 }
  0xa6   : > { %780 = vmatmul.msk.f32.vlgmr.msra.gmra.mxu3 %vm248_vm0, %v335_v34  ;;  %v322_v36 = vsel %vm307_vm2, %v317_v35, 0.0  ;;  %v342_v39 = vsel %vm329_vm4, %v336_v38, 0.0 }
  0xa7   : > { %774 = vmatmul.msk.f32.vlgmr.msra.gmra.mxu2 %vm248_vm0, %v322_v36 }
  0xae   : > { %781 = vmatmul.msk.f32.gmra.mxu3 %vm248_vm0, %v342_v39 }
  0xaf   : > { %775 = vmatmul.msk.f32.gmra.mxu2 %vm248_vm0, %v316_v40 }
 0x118   : > { %v376_v57 = vpop.f32.mrf.mxu1 }
 0x120   : > { %v379_v0 = vpop.f32.mrf.mxu1 }
 0x129   : > { %v439_v58 = vpop.f32.mrf.mxu3 }
 0x12a   : > { %v405_v59 = vpop.f32.mrf.mxu2 }
 0x12b   : > { %v406_v60 = vadd.f32 %v405_v59, %v376_v57 }
 0x12d   : > { %v445_v62 = vadd.f32 %v439_v58, %v406_v60 }
 0x12f   : > { %v448_v63 = vadd.f32 %v447_v61, %v445_v62 }
 0x131   : > { %788 = vmatmul.msk.f32.vlgmr.msrb.gmra.mxu1 %vm248_vm0, %v448_v63  ;;  %450 = vst.msk [vmem:[%s1139_s6] sm:$0xff] %vm248_vm0, %v448_v63  ;;  %v442_v3 = vpop.f32.mrf.mxu3  ;;  %v452_v6 = vrot.slane %v448_v63, 1  ;;  %v466_v7 = vrot.slane %v448_v63, 2  ;;  %v485_v10 = vrot.slane %v448_v63, 3 }
 0x132   : > { %v408_v1 = vpop.f32.mrf.mxu2 }
 0x133   : > { %v409_v2 = vadd.f32 %v408_v1, %v379_v0 }
 0x135   : > { %v446_v4 = vadd.f32 %v442_v3, %v409_v2 }
 0x137   : > { %v449_v5 = vadd.f32 %v447_v61, %v446_v4 }
 0x139   : > { %789 = vmatmul.msk.f32.gmra.mxu1 %vm248_vm0, %v449_v5  ;;  %v453_v8 = vrot.slane %v449_v5, 1  ;;  %v467_v9 = vrot.slane %v449_v5, 2  ;;  %v486_v11 = vrot.slane %v449_v5, 3  ;;  %451 = vst.msk [vmem:[%s1139_s6 + $0x8] sm:$0xff] %vm248_vm0, %v449_v5 }
 0x13b   : > { %v454_v12 = vsel %vm334_vm1, %v452_v6, %v453_v8  ;;  %v469_v13 = vsel %vm468_vm5, %v466_v7, %v467_v9  ;;  %v488_v14 = vsel %vm487_vm6, %v485_v10, %v486_v11  ;;  %v455_v17 = vsel %vm334_vm1, %v453_v8, %v452_v6 }
 0x13c   : > { %786 = vmatmul.msk.f32.vlgmr.msrb.gmra.mxu0 %vm248_vm0, %v454_v12  ;;  %794 = vmatmul.msk.f32.vlgmr.msrb.gmra.mxu2 %vm248_vm0, %v469_v13  ;;  %v470_v19 = vsel %vm468_vm5, %v467_v9, %v466_v7  ;;  %v489_v20 = vsel %vm487_vm6, %v486_v11, %v485_v10  ;;  %v457_v21 = vsel %vm329_vm4, %v455_v17, 0.0 }
 0x13d   : > { %800 = vmatmul.msk.f32.vlgmr.msrb.gmra.mxu3 %vm248_vm0, %v488_v14  ;;  %v476_v23 = vsel %vm463_vm7, %v470_v19, 0.0  ;;  %v495_v24 = vsel %vm482_vm8, %v489_v20, 0.0 }
 0x144   : > { %787 = vmatmul.msk.f32.gmra.mxu0 %vm248_vm0, %v457_v21  ;;  %795 = vmatmul.msk.f32.gmra.mxu2 %vm248_vm0, %v476_v23 }
 0x145   : > { %801 = vmatmul.msk.f32.gmra.mxu3 %vm248_vm0, %v495_v24 }
 0x146   : > { %876 = shalt.err (!%p873_p3)
}
 0x147   : > { %s913_s26 = smov 128   ;;  %s914_s6 = smov 8   ;;  %v635_v30 = vperm.slane %v1055_v18, 2  ;;  %vm638_vm9 = vcmask 64512  }
 0x148   : > { %808 = dma.vmem_to_hbm [thread:$0]  (%p983_p5), %s660_s12, 256, %s662_s13, %s642_s14, %s913_s26, %s913_s26, %s914_s6  }
 0x149   : > { %s238_s11 = scalar_lea.vmem %s1215_s5, %s759_s23 }
 0x1ae   : > { %v557_v25 = vpop.f32.mrf.mxu1 }
 0x1b6   : > { %v560_v34 = vpop.f32.mrf.mxu1 }
 0x1b9   : > { %v528_v22 = vpop.f32.mrf.mxu0 }
 0x1ba   : > { %v558_v26 = vadd.f32 %v557_v25, %v528_v22 }
 0x1bf   : > { %v591_v27 = vpop.f32.mrf.mxu2 }
 0x1c0   : > { %v597_v28 = vadd.f32 %v591_v27, %v558_v26  ;;  %v627_v29 = vpop.f32.mrf.mxu3 }
 0x1c1   : > { %v531_v32 = vpop.f32.mrf.mxu0 }
 0x1c2   : > { %v633_v31 = vadd.f32 %v627_v29, %v597_v28  ;;  %v561_v35 = vadd.f32 %v560_v34, %v531_v32 }
 0x1c4   : > { %v636_v33 = vadd.f32 %v635_v30, %v633_v31 }
 0x1c6   : > { %639 = vst.msk [vmem:[%s238_s11] sm:$0xff] %vm638_vm9, %v636_v33 }
 0x1c7   : > { %v594_v36 = vpop.f32.mrf.mxu2 }
 0x1c8   : > { %v598_v37 = vadd.f32 %v594_v36, %v561_v35  ;;  %v630_v38 = vpop.f32.mrf.mxu3 }
 0x1ca   : > { %v634_v39 = vadd.f32 %v630_v38, %v598_v37 }
 0x1cc   : > { %v637_v40 = vadd.f32 %v635_v30, %v634_v39 }
 0x1ce   : > { %640 = vst.msk [vmem:[%s238_s11 + $0x8] sm:$0xff] %vm638_vm9, %v637_v40 }
 0x1cf PF: > { %p814_p4 = scmp.ge.s32.totalorder %s911_s21, 2  ;;  %s680_s28 = sand.u32 1, %s899_s18  }
 0x1d0   : > { %s681_s9 = scalar_lea.sflag [#allocation3], %s680_s28 }
 0x1d1   : > { %p811_p5 = pnand %p814_p4, %p987_p6 }
 0x1d3   : > { %p812_p7 = pneg %p811_p5 }
 0x1d5   : > { %894 = dma.done.wait (%p812_p7), %s681_s9, 256  }
 0x1d6   : > { %896 = vsyncadd (%p812_p7), %s681_s9, 4294967040  ;;  %p16_p8 = scmp.ge.s32.totalorder %s970_s24, 4   ;;  %s1218_s18 = smov %s903_s19 }
 0x1d7   : > { %s1219_s19 = smov %s907_s20  ;;  %s1220_s20 = smov %s981_s27 }
 0x1d8   : > { %s1221_s21 = smov %s970_s24  ;;  %18 = sbr.rel (!%p16_p8) target bundleno = 3 (0x3), region = 89 }
 0x1dd   :  { %695 = vsyncpa [#allocation3], 1 }
 0x1de   :  { %697 = vsyncpa [#allocation3 + $0x1], 1 }

</bundles_post_ra>
